<compile_context>
chip_gen: v6e
topology: v6e:2x2x1
jax: 0.10.0
libtpu: 0.0.40
codegen_flags: <defaults>
</compile_context>

<pallas_src>
import functools

import jax
import jax.numpy as jnp
from jax.experimental import pallas as pl
from jax.experimental.pallas import tpu as pltpu

LANES = 128
SUBLANES = 8
MIN_TILE_ELEMS = SUBLANES * LANES          # 1024 elements = one f32 vreg
MAX_TILE_ROWS = 2048                       # (2048, 128) f32 ~= 1 MiB per input block
EP = 1e-07


def _elementwise_focal(x, t, gamma, alpha):
    """Reference focal-loss formula, elementwise, in f32."""
    xc = jnp.clip(x, EP, 1.0 - EP)
    coef1 = alpha * (1.0 - xc) ** gamma
    coef2 = alpha * xc ** gamma
    return (-coef1 * jnp.log(xc) * t
            - coef2 * jnp.log(1.0 - xc) * (1.0 - t))


def _focal_loss_kernel(x_ref, t_ref, o_ref, *, gamma, alpha, valid, tile_rows):
    i = pl.program_id(0)
    last = pl.num_programs(0) - 1

    # Cast inside the kernel so HBM traffic stays at the input's native width.
    x = x_ref[...].astype(jnp.float32)
    t = t_ref[...].astype(jnp.float32)
    loss = _elementwise_focal(x, t, gamma, alpha)

    @pl.when(i < last)
    def _():
        # Steady-state tiles never contain padding -> no mask work here.
        o_ref[...] = jnp.zeros_like(o_ref) + jnp.sum(loss)

    @pl.when(i == last)
    def _():
        # Only the final tile may contain out-of-bounds / padded rows.
        row = jax.lax.broadcasted_iota(jnp.int32, loss.shape, 0)
        col = jax.lax.broadcasted_iota(jnp.int32, loss.shape, 1)
        rel = row * LANES + col                        # flat index within tile
        remaining = valid - i * (tile_rows * LANES)    # valid elems in this tile
        masked = jnp.where(rel < remaining, loss, 0.0)
        o_ref[...] = jnp.zeros_like(o_ref) + jnp.sum(masked)


def focal_loss(inp, target, gamma=3, alpha=1):
    """Pallas TPU implementation of focalLoss.forward -> scalar mean loss."""
    assert inp.shape == target.shape
    total = int(inp.size)

    # Keep gamma a static Python int when possible (integer_pow, not exp/log).
    if isinstance(gamma, float) and float(gamma).is_integer():
        gamma = int(gamma)
    alpha = float(alpha)

    # Flatten in the native dtype; cast to f32 happens inside the kernel.
    x = jnp.ravel(inp)
    t = jnp.ravel(target)

    # Process the (8*128)-aligned prefix in the kernel; sum the tiny tail
    # (< 1024 elements) in plain JAX so no full-array pad copy is needed.
    main = (total // MIN_TILE_ELEMS) * MIN_TILE_ELEMS
    tail_sum = jnp.float32(0.0)
    if main == 0:
        # Tiny input: pad up to a single minimal tile (negligible copy).
        pad = MIN_TILE_ELEMS - total
        x_k = jnp.pad(x, (0, pad))
        t_k = jnp.pad(t, (0, pad))
        valid = total
    else:
        x_k = x if main == total else x[:main]
        t_k = t if main == total else t[:main]
        valid = main
        if main < total:
            tail_sum = jnp.sum(_elementwise_focal(
                x[main:].astype(jnp.float32),
                t[main:].astype(jnp.float32), gamma, alpha))

    rows = x_k.size // LANES              # multiple of 8 by construction
    tile_rows = min(MAX_TILE_ROWS, rows)  # full extent for small inputs
    grid = pl.cdiv(rows, tile_rows)

    x2 = x_k.reshape(rows, LANES)
    t2 = t_k.reshape(rows, LANES)

    kernel = functools.partial(
        _focal_loss_kernel,
        gamma=gamma, alpha=alpha, valid=valid, tile_rows=tile_rows)

    # NOTE: int32 index math in the mask assumes < 2**31 elements per call.
    partials = pl.pallas_call(
        kernel,
        out_shape=jax.ShapeDtypeStruct((grid, 1), jnp.float32),
        grid_spec=pltpu.PrefetchScalarGridSpec(
            num_scalar_prefetch=0,
            grid=(grid,),
            in_specs=[
                pl.BlockSpec((tile_rows, LANES), lambda i: (i, 0)),
                pl.BlockSpec((tile_rows, LANES), lambda i: (i, 0)),
            ],
            # Per-program partial sums -> grid axis can be "parallel"
            # (uses both TensorCores on v7x; harmless on v5e/v6e).
            out_specs=pl.BlockSpec((1, 1), lambda i: (i, 0)),
        ),
        compiler_params=pltpu.CompilerParams(
            dimension_semantics=("parallel",),
            vmem_limit_bytes=32 * 1024 * 1024),
    )(x2, t2)

    return (jnp.sum(partials) + tail_sum) / jnp.float32(total)


def focal_loss_ref(inp, target, gamma=3, alpha=1):
    loss = _elementwise_focal(inp.astype(jnp.float32),
                              target.astype(jnp.float32), gamma, float(alpha))
    return jnp.mean(loss)


if __name__ == "__main__":
    key = jax.random.PRNGKey(0)
    k1, k2, k3, k4 = jax.random.split(key, 4)

    # Segmentation-style focal loss: NCHW probabilities vs binary targets.
    shape = (2, 4, 16, 16)
    inp = jax.random.uniform(k1, shape, dtype=jnp.float32)
    target = jax.random.bernoulli(k2, 0.5, shape).astype(jnp.float32)

    out = focal_loss(inp, target, gamma=3, alpha=1)
    out = jax.block_until_ready(out)
    ref = focal_loss_ref(inp, target, gamma=3, alpha=1)
    assert jnp.allclose(out, ref, rtol=1e-5, atol=1e-6), (out, ref)

    # Odd (non-1024-divisible) shape exercises the prefix + JAX-tail path.
    shape2 = (3, 5, 17, 19)
    inp2 = jax.random.uniform(k3, shape2, dtype=jnp.float32)
    target2 = jax.random.bernoulli(k4, 0.5, shape2).astype(jnp.float32)
    out2 = jax.block_until_ready(focal_loss(inp2, target2, gamma=3, alpha=1))
    ref2 = focal_loss_ref(inp2, target2, gamma=3, alpha=1)
    assert jnp.allclose(out2, ref2, rtol=1e-5, atol=1e-6), (out2, ref2)

    print("KERNEL_OK")
</pallas_src>

<mosaic_0001>
module attributes {stable_mosaic.version = 11 : i64} {
  func.func @_focal_loss_kernel(%arg0: i32, %arg1: memref<16x128xf32, #tpu.memory_space<vmem>>, %arg2: memref<16x128xf32, #tpu.memory_space<vmem>>, %arg3: memref<1x1xf32, #tpu.memory_space<vmem>>) attributes {dimension_semantics = [#tpu.dimension_semantics<parallel>], iteration_bounds = array<i64: 1>, scalar_prefetch = 0 : i64, scratch_operands = 0 : i64, tpu.core_type = #tpu.core_type<tc>, window_params = [{transform_indices = @transform_0, window_bounds = array<i64: 16, 128>}, {transform_indices = @transform_1, window_bounds = array<i64: 16, 128>}, {transform_indices = @transform_2, window_bounds = array<i64: 1, 1>}]} {
    %c0 = arith.constant 0 : index
    %c0_0 = arith.constant 0 : index
    %0 = vector.load %arg1[%c0, %c0_0] : memref<16x128xf32, #tpu.memory_space<vmem>>, vector<16x128xf32>
    %c0_1 = arith.constant 0 : index
    %c0_2 = arith.constant 0 : index
    %1 = vector.load %arg2[%c0_1, %c0_2] : memref<16x128xf32, #tpu.memory_space<vmem>>, vector<16x128xf32>
    %cst = arith.constant 1.000000e-07 : f32
    %cst_3 = arith.constant 0.99999988 : f32
    %2 = vector.broadcast %cst : f32 to vector<16x128xf32>
    %3 = arith.maximumf %2, %0 : vector<16x128xf32>
    %4 = vector.broadcast %cst_3 : f32 to vector<16x128xf32>
    %5 = arith.minimumf %4, %3 : vector<16x128xf32>
    %cst_4 = arith.constant 1.000000e+00 : f32
    %6 = vector.broadcast %cst_4 : f32 to vector<16x128xf32>
    %7 = arith.subf %6, %5 : vector<16x128xf32>
    %8 = arith.mulf %7, %7 : vector<16x128xf32>
    %9 = arith.mulf %7, %8 : vector<16x128xf32>
    %cst_5 = arith.constant 1.000000e+00 : f32
    %10 = vector.broadcast %cst_5 : f32 to vector<16x128xf32>
    %11 = arith.mulf %10, %9 : vector<16x128xf32>
    %12 = arith.mulf %5, %5 : vector<16x128xf32>
    %13 = arith.mulf %5, %12 : vector<16x128xf32>
    %cst_6 = arith.constant 1.000000e+00 : f32
    %14 = vector.broadcast %cst_6 : f32 to vector<16x128xf32>
    %15 = arith.mulf %14, %13 : vector<16x128xf32>
    %cst_7 = arith.constant 0.000000e+00 : f32
    %16 = vector.broadcast %cst_7 : f32 to vector<16x128xf32>
    %17 = arith.subf %16, %11 : vector<16x128xf32>
    %18 = math.log %5 : vector<16x128xf32>
    %19 = arith.mulf %17, %18 : vector<16x128xf32>
    %20 = arith.mulf %19, %1 : vector<16x128xf32>
    %cst_8 = arith.constant 1.000000e+00 : f32
    %21 = vector.broadcast %cst_8 : f32 to vector<16x128xf32>
    %22 = arith.subf %21, %5 : vector<16x128xf32>
    %23 = math.log %22 : vector<16x128xf32>
    %24 = arith.mulf %15, %23 : vector<16x128xf32>
    %cst_9 = arith.constant 1.000000e+00 : f32
    %25 = vector.broadcast %cst_9 : f32 to vector<16x128xf32>
    %26 = arith.subf %25, %1 : vector<16x128xf32>
    %27 = arith.mulf %24, %26 : vector<16x128xf32>
    %28 = arith.subf %20, %27 : vector<16x128xf32>
    %c0_i32 = arith.constant 0 : i32
    %29 = arith.cmpi slt, %arg0, %c0_i32 : i32
    %30 = arith.extui %29 : i1 to i32
    %c0_i32_10 = arith.constant 0 : i32
    %31 = arith.cmpi ne, %30, %c0_i32_10 : i32
    scf.if %31 {
      %cst_13 = arith.constant 0.000000e+00 : f32
      %35 = vector.broadcast %cst_13 : f32 to vector<1x1xf32>
      %36 = vector.shape_cast %28 : vector<16x128xf32> to vector<1x16x128xf32>
      %cst_14 = arith.constant dense<0.000000e+00> : vector<1xf32>
      %37 = vector.multi_reduction <add>, %36, %cst_14 [1, 2] : vector<1x16x128xf32> to vector<1xf32>
      %38 = vector.shape_cast %37 : vector<1xf32> to vector<1x1x1xf32>
      %39 = vector.extract %38[0, 0, 0] : f32 from vector<1x1x1xf32>
      %40 = vector.broadcast %39 : f32 to vector<1x1xf32>
      %41 = arith.addf %35, %40 : vector<1x1xf32>
      %c0_15 = arith.constant 0 : index
      %c0_16 = arith.constant 0 : index
      %42 = vector.load %arg3[%c0_15, %c0_16] : memref<1x1xf32, #tpu.memory_space<vmem>>, vector<1x1xf32>
      tpu.vector_store %arg3[%c0_15, %c0_16], %41 {strides = array<i32>} : memref<1x1xf32, #tpu.memory_space<vmem>>, vector<1x1xf32>,
    } else {
    }
    %c0_i32_11 = arith.constant 0 : i32
    %32 = arith.cmpi eq, %arg0, %c0_i32_11 : i32
    %33 = arith.extui %32 : i1 to i32
    %c0_i32_12 = arith.constant 0 : i32
    %34 = arith.cmpi ne, %33, %c0_i32_12 : i32
    scf.if %34 {
      %35 = tpu.iota {dimensions = array<i32: 0>} : vector<16x128xi32>
      %36 = tpu.iota {dimensions = array<i32: 1>} : vector<16x128xi32>
      %c128_i32 = arith.constant 128 : i32
      %37 = vector.broadcast %c128_i32 : i32 to vector<16x128xi32>
      %38 = arith.muli %35, %37 : vector<16x128xi32>
      %39 = arith.addi %38, %36 : vector<16x128xi32>
      %c2048_i32 = arith.constant 2048 : i32
      %40 = arith.muli %arg0, %c2048_i32 : i32
      %c2048_i32_13 = arith.constant 2048 : i32
      %41 = arith.subi %c2048_i32_13, %40 : i32
      %42 = vector.broadcast %41 : i32 to vector<16x128xi32>
      %43 = arith.cmpi slt, %39, %42 : vector<16x128xi32>
      %cst_14 = arith.constant 0.000000e+00 : f32
      %44 = vector.broadcast %cst_14 : f32 to vector<16x128xf32>
      %45 = arith.select %43, %28, %44 : vector<16x128xi1>, vector<16x128xf32>
      %cst_15 = arith.constant 0.000000e+00 : f32
      %46 = vector.broadcast %cst_15 : f32 to vector<1x1xf32>
      %47 = vector.shape_cast %45 : vector<16x128xf32> to vector<1x16x128xf32>
      %cst_16 = arith.constant dense<0.000000e+00> : vector<1xf32>
      %48 = vector.multi_reduction <add>, %47, %cst_16 [1, 2] : vector<1x16x128xf32> to vector<1xf32>
      %49 = vector.shape_cast %48 : vector<1xf32> to vector<1x1x1xf32>
      %50 = vector.extract %49[0, 0, 0] : f32 from vector<1x1x1xf32>
      %51 = vector.broadcast %50 : f32 to vector<1x1xf32>
      %52 = arith.addf %46, %51 : vector<1x1xf32>
      %c0_17 = arith.constant 0 : index
      %c0_18 = arith.constant 0 : index
      %53 = vector.load %arg3[%c0_17, %c0_18] : memref<1x1xf32, #tpu.memory_space<vmem>>, vector<1x1xf32>
      tpu.vector_store %arg3[%c0_17, %c0_18], %52 {strides = array<i32>} : memref<1x1xf32, #tpu.memory_space<vmem>>, vector<1x1xf32>,
    } else {
    }
    return
  }
  func.func @transform_0(%arg0: i32) -> (i32, i32) {
    %c0_i32 = arith.constant 0 : i32
    %c0_i32_0 = arith.constant 0 : i32
    return %arg0, %c0_i32 : i32, i32
  }
  func.func @transform_1(%arg0: i32) -> (i32, i32) {
    %c0_i32 = arith.constant 0 : i32
    %c0_i32_0 = arith.constant 0 : i32
    return %arg0, %c0_i32 : i32, i32
  }
  func.func @transform_2(%arg0: i32) -> (i32, i32) {
    %c0_i32 = arith.constant 0 : i32
    %c0_i32_0 = arith.constant 0 : i32
    return %arg0, %c0_i32 : i32, i32
  }
}

</mosaic_0001>

<bundles_post_ra>
// kernel: tpu_custom_call.1
= control target key start
LH: loop header
LB: loop body
LE: loop exit
PB: predicated region body
PF: predicated region fallthrough
CT: control target
= control target key end

     0   :  { %7 = vsyncpa [#allocation3], 0  ;;  %s258_s0 = inlined_call_operand.hbm [shape: f32[16,128], index: 0, kind: input, shape index: {}]   ;;  %s259_s1 = inlined_call_operand.hbm [shape: f32[16,128], index: 1, kind: input, shape index: {}]   ;;  %s260_s2 = inlined_call_operand.hbm [shape: f32[1,1], index: 2, kind: output, shape index: {}]  }
   0x1   :  { %8 = vsyncpa [#allocation6], 0 }
   0x2   :  { %9 = vsyncpa [#allocation4], 0  ;;  %s229_s9 = smov [#allocation2]  }
   0x3   :  { %s15_s10 = sshll.u32 %s229_s9, 4  ;;  %s16_s10 = int_to_ptr.vmem [resolvable:$true] %s15_s10 }
   0x4   :  { %s171_s11 = scalar_lea.vmem %s16_s10, 256  ;;  %p176_p1 = scmp.lt.s32.totalorder %s16_s10, %s16_s10 }
   0x5   :  { %p172_p0 = scmp.ne.s32.totalorder %s16_s10, %s171_s11  ;;  %p177_p2 = scmp.lt.s32.totalorder %s171_s11, %s171_s11 }
   0x7   :  { %p178_p3 = por %p177_p2, %p176_p1 }
   0x9   :  { %p179_p4 = pnand %p178_p3, %p172_p0 }
   0xb   :  { %182 = shalt.err (!%p179_p4)
}
   0xc   :  { %s230_s12 = smov 128   ;;  %s231_s13 = smov 8  }
   0xd   :  { %21 = dma.hbm_to_vmem [thread:$0]  %s258_s0, 256, %s16_s10, [#allocation3], %s230_s12, %s230_s12, %s231_s13  }
   0xe   :  { %s232_s16 = smov [#allocation5]  }
   0xf   :  { %s27_s17 = sshll.u32 %s232_s16, 4  ;;  %s28_s17 = int_to_ptr.vmem [resolvable:$true] %s27_s17 }
  0x10   :  { %s191_s18 = scalar_lea.vmem %s28_s17, 256  ;;  %p196_p6 = scmp.lt.s32.totalorder %s28_s17, %s28_s17 }
  0x11   :  { %p192_p5 = scmp.ne.s32.totalorder %s28_s17, %s191_s18  ;;  %p197_p7 = scmp.lt.s32.totalorder %s191_s18, %s191_s18 }
  0x13   :  { %p198_p8 = por %p197_p7, %p196_p6 }
  0x15   :  { %p199_p9 = pnand %p198_p8, %p192_p5 }
  0x17   :  { %202 = shalt.err (!%p199_p9)
}
  0x18   :  { %33 = dma.hbm_to_vmem [thread:$0]  %s259_s1, 256, %s28_s17, [#allocation6], %s230_s12, %s230_s12, %s231_s13  }
  0x19   :  { %223 = dma.done.wait [#allocation3], 256  }
  0x1a   :  { %224 = vsyncadd [#allocation3], 4294967040 }
  0x1b   :  { %225 = dma.done.wait [#allocation6], 256  }
  0x1c   :  { %226 = vsyncadd [#allocation6], 4294967040  ;;  %v40_v0 = vld [vmem:[#allocation2] sm:$0xff]  ;;  %v41_v1 = vld [vmem:[#allocation2 + $0x8] sm:$0xff]  ;;  %v102_v8 = vlaneseq  ;;  %s233_s0 = smov [#allocation7]   ;;  %vm130_vm2 = vcmask 0  }
  0x1d   :  { %v44_v2 = vmax.f32 %v40_v0, 1e-07  ;;  %v45_v3 = vmax.f32 %v41_v1, 1e-07  ;;  %v42_v19 = vld [vmem:[#allocation5] sm:$0xff]  ;;  %v43_v25 = vld [vmem:[#allocation5 + $0x8] sm:$0xff] }
  0x1e   :  { %v103_v11 = vshrl.u32 %v102_v8, 7  ;;  %v106_v22 = vand.u32 127, %v102_v8  ;;  %v74_v34 = vsub.f32 1.0, %v42_v19  ;;  %v75_v37 = vsub.f32 1.0, %v43_v25  ;;  %s138_s1 = sshll.u32 %s233_s0, 4  ;;  %s139_s1 = int_to_ptr.vmem [resolvable:$true] %s138_s1 }
  0x1f   :  { %v46_v4 = vmin.f32 %v44_v2, 0.9999999  ;;  %v47_v5 = vmin.f32 %v45_v3, 0.9999999  ;;  %s203_s22 = scalar_lea.vmem %s139_s1, 16  ;;  %s207_s23 = scalar_lea.vmem %s139_s1, 32 }
  0x20   :  { %v104_v15 = vadd.s32 8, %v103_v11  ;;  %v107_v23 = vmul.u32 128, %v103_v11  ;;  %p204_p10 = scmp.ne.s32.totalorder %s139_s1, %s203_s22  ;;  %p208_p11 = scmp.lt.s32.totalorder %s139_s1, %s139_s1 }
  0x21   :  { %v48_v6 = vsub.f32 1.0, %v46_v4  ;;  %v49_v7 = vsub.f32 1.0, %v47_v5  ;;  %155 = vlog2.f32 %v46_v4  ;;  %v54_v14 = vmul.f32 %v46_v4, %v46_v4  ;;  %p209_p12 = scmp.lt.s32.totalorder %s207_s23, %s203_s22 }
  0x22   :  { %157 = vlog2.f32 %v47_v5  ;;  %v55_v16 = vmul.f32 %v47_v5, %v47_v5  ;;  %v108_v27 = vmul.u32 128, %v104_v15  ;;  %v109_v38 = vadd.s32 %v107_v23, %v106_v22 }
  0x23   :  { %159 = vlog2.f32 %v48_v6  ;;  %v50_v9 = vmul.f32 %v48_v6, %v48_v6  ;;  %v51_v10 = vmul.f32 %v49_v7, %v49_v7  ;;  %v56_v26 = vmul.f32 %v54_v14, %v46_v4  ;;  %p210_p13 = por %p209_p12, %p208_p11 }
  0x24   :  { %161 = vlog2.f32 %v49_v7  ;;  %v57_v29 = vmul.f32 %v55_v16, %v47_v5  ;;  %v110_v41 = vadd.s32 %v108_v27, %v106_v22  ;;  %vm114_vm0 = vcmp.lt.s32.totalorder %v109_v38, 2048 }
  0x25   :  { %v52_v12 = vmul.f32 %v50_v9, %v48_v6  ;;  %v53_v13 = vmul.f32 %v51_v10, %v49_v7  ;;  %p211_p0 = pnand %p210_p13, %p204_p10 }
  0x26   :  { %vm115_vm1 = vcmp.lt.s32.totalorder %v110_v41, 2048 }
  0x27   :  { %v58_v17 = vsub.f32 0.0, %v52_v12  ;;  %v59_v20 = vsub.f32 0.0, %v53_v13 }
  0x2e   :  { %v156_v18 = vpop.eup %155 }
  0x2f   :  { %v61_v21 = vmul.f32 0.6931472, %v156_v18  ;;  %v158_v24 = vpop.eup %157 }
  0x30   :  { %v160_v28 = vpop.eup %159  ;;  %v63_v30 = vmul.f32 0.6931472, %v158_v24 }
  0x31   :  { %v64_v31 = vmul.f32 %v61_v21, %v58_v17  ;;  %v162_v32 = vpop.eup %161  ;;  %v69_v33 = vmul.f32 0.6931472, %v160_v28 }
  0x32   :  { %v65_v35 = vmul.f32 %v63_v30, %v59_v20  ;;  %v71_v36 = vmul.f32 0.6931472, %v162_v32 }
  0x33   :  { %v66_v39 = vmul.f32 %v64_v31, %v42_v19  ;;  %v72_v40 = vmul.f32 %v69_v33, %v56_v26 }
  0x34   :  { %v67_v42 = vmul.f32 %v65_v35, %v43_v25  ;;  %v73_v43 = vmul.f32 %v71_v36, %v57_v29 }
  0x35   :  { %v76_v44 = vmul.f32 %v74_v34, %v72_v40 }
  0x36   :  { %v77_v45 = vmul.f32 %v75_v37, %v73_v43 }
  0x37   :  { %v78_v46 = vsub.f32 %v66_v39, %v76_v44 }
  0x38   :  { %v79_v47 = vsub.f32 %v67_v42, %v77_v45 }
  0x39   :  { %v116_v48 = vsel %vm114_vm0, %v78_v46, 0.0 }
  0x3a   :  { %v117_v49 = vsel %vm115_vm1, %v79_v47, 0.0 }
  0x3b   :  { %v118_v50 = vadd.f32 %v117_v49, %v116_v48 }
  0x3d   :  { %119 = vadd.xlane.f32.xlu0 %v118_v50 }
  0xc6   :  { %v120_v51 = vpop.xlane.xlu0 %119 }
  0xc7   :  { %v121_v52 = vrot.slane %v120_v51, 4 }
  0xc9   :  { %v122_v53 = vadd.f32 %v121_v52, %v120_v51 }
  0xcb   :  { %v123_v54 = vrot.slane %v122_v53, 2 }
  0xcd   :  { %v124_v55 = vadd.f32 %v123_v54, %v122_v53 }
  0xcf   :  { %v125_v56 = vrot.slane %v124_v55, 1 }
  0xd1   :  { %v126_v57 = vadd.f32 %v125_v56, %v124_v55 }
  0xd3   :  { %148 = vpush %v126_v57 }
 0x104   :  { %s149_s21 = spop %148 }
 0x105   :  { %v128_v58 = vstv %s149_s21 }
 0x106   :  { %131 = vst.msk [vmem:[#allocation7] sm:$0x1] %vm130_vm2, %v128_v58 }
 0x107   :  { %214 = shalt.err (!%p211_p0)
}
 0x108   :  { %141 = dma.vmem_to_hbm [thread:$0]  %s139_s1, 16, %s260_s2, [#allocation4]  }
 0x109   :  { %227 = dma.done.wait [#allocation4], 16  }
 0x10a   :  { %228 = vsyncadd [#allocation4], 4294967280 }
 0x10b   :  { %145 = vsyncpa [#allocation3], 1 }
 0x10c   :  { %146 = vsyncpa [#allocation6], 1 }
 0x10d   :  { %147 = vsyncpa [#allocation4], 1 }

</bundles_post_ra>
